<compile_context>
chip_gen: v6e
topology: v6e:2x2x1
jax: 0.10.0
libtpu: 0.0.40
codegen_flags: <defaults>
</compile_context>

<pallas_src>
import functools
import math

import jax
import jax.numpy as jnp
from jax.experimental import pallas as pl
from jax.experimental.pallas import tpu as pltpu

HIDDEN = 64
WIDE = 2 * HIDDEN  # 128 — fused lane width


def _round_up(n, m):
    return (n + m - 1) // m * m


# ----------------------------------------------------------------------------
# Fused per-block kernel: 3 bf16 matmuls with f32 accumulation.
#   h1  = tanh(x @ W1 + b1)          W1 = [cw1 | aw1]            (NI_pad, 128)
#   h2  = tanh(h1 @ W2 + b2)         W2 = blockdiag(cw2, aw2)    (128, 128)
#   y   = h2 @ W3 + b3               W3: col0 = critic head, cols 1..1+A = mean
#   y[:, 1+A] = logp constant (carried entirely by the f32 bias b3)
# Weights/biases are resident (same block every grid step); x/out are tiled
# over the batch.
# ----------------------------------------------------------------------------
def policy_act_kernel(x_ref, w_ref, b_ref, out_ref, *, rows, ni_pad, out_lanes):
    row_w1, row_w2, row_w3 = rows

    x = x_ref[...]                                       # (TB, NI_pad) bf16

    w1 = w_ref[row_w1:row_w1 + ni_pad, :]                # (NI_pad, 128) bf16
    h1 = jnp.tanh(
        jnp.dot(x, w1, preferred_element_type=jnp.float32)
        + b_ref[0:1, :])                                 # f32, [critic | actor]

    w2 = w_ref[row_w2:row_w2 + WIDE, :]                  # (128, 128) block-diag
    h2 = jnp.tanh(
        jnp.dot(h1.astype(jnp.bfloat16), w2, preferred_element_type=jnp.float32)
        + b_ref[1:2, :])

    w3 = w_ref[row_w3:row_w3 + WIDE, :]                  # (128, 128) fused heads
    y = (jnp.dot(h2.astype(jnp.bfloat16), w3, preferred_element_type=jnp.float32)
         + b_ref[2:3, :])                                # (TB, 128) f32

    if out_lanes == WIDE:
        out_ref[...] = y
    else:
        out_ref[...] = y[:, :out_lanes]                  # narrow throughput output


# ----------------------------------------------------------------------------
# One-time parameter packing (init-time; zero runtime cost on the hot path).
# Weights -> one bf16 (ROWS, 128) buffer, 16-row-aligned segments.
# Biases  -> one f32 (8, 128) buffer (rows 0/1/2 = b1/b2/b3).
# ----------------------------------------------------------------------------
def pack_params(p, num_inputs, num_actions):
    A = num_actions
    assert 2 + A <= WIDE, "fused head requires 2 + num_actions <= 128 lanes"
    ni_pad = _round_up(num_inputs, 16)   # bf16 tile is (16, 128)

    # layer 1: concat critic | actor along output lanes, zero-pad K to ni_pad
    w1 = jnp.concatenate([p["cw1"], p["aw1"]], axis=1)            # (NI, 128)
    w1 = jnp.pad(w1, ((0, ni_pad - num_inputs), (0, 0)))          # (NI_pad, 128)
    b1 = jnp.concatenate([p["cb1"], p["ab1"]], axis=1)            # (1, 128)

    # layer 2: block-diagonal so branches stay independent
    w2 = jnp.zeros((WIDE, WIDE), jnp.float32)
    w2 = w2.at[:HIDDEN, :HIDDEN].set(p["cw2"])
    w2 = w2.at[HIDDEN:, HIDDEN:].set(p["aw2"])
    b2 = jnp.concatenate([p["cb2"], p["ab2"]], axis=1)            # (1, 128)

    # fused heads: value in column 0, action mean in columns 1..1+A,
    # constant log-prob of the deterministic action in column 1+A (f32 bias).
    w3 = jnp.zeros((WIDE, WIDE), jnp.float32)
    w3 = w3.at[:HIDDEN, 0:1].set(p["hw"])
    w3 = w3.at[HIDDEN:, 1:1 + A].set(p["mw"])
    logp_const = -(jnp.sum(p["logstd"]) + 0.5 * A * math.log(2.0 * math.pi))
    b3 = jnp.zeros((1, WIDE), jnp.float32)
    b3 = b3.at[0, 0].set(p["hb"][0, 0])
    b3 = b3.at[0, 1:1 + A].set(p["mb"][0, :])
    b3 = b3.at[0, 1 + A].set(logp_const)

    row_w1 = 0
    row_w2 = ni_pad
    row_w3 = ni_pad + WIDE
    rows = (row_w1, row_w2, row_w3)

    packed_w = jnp.concatenate([w1, w2, w3], axis=0).astype(jnp.bfloat16)
    packed_b = jnp.concatenate(
        [b1, b2, b3, jnp.zeros((5, WIDE), jnp.float32)], axis=0)  # (8, 128) f32
    return packed_w, packed_b, rows


# ----------------------------------------------------------------------------
# Wrapper: pads batch/features, tiles the batch over a parallel grid, keeps
# params resident, and slices the packed output back into (value, action, logp).
# ----------------------------------------------------------------------------
def policy_act(x, packed_w, packed_b, rows, num_inputs, num_actions, *,
               block_b=256):
    A = num_actions
    B = x.shape[0]
    ni_pad = _round_up(num_inputs, 16)

    x = x.astype(jnp.float32)
    if x.shape[1] != ni_pad:                       # pad features -> aligned K
        x = jnp.pad(x, ((0, 0), (0, ni_pad - x.shape[1])))

    TB = min(block_b, max(8, _round_up(B, 8)))     # batch tile (vreg-bounded)
    Bp = _round_up(B, TB)
    if Bp != B:
        x = jnp.pad(x, ((0, Bp - B), (0, 0)))
    x = x.astype(jnp.bfloat16)

    # Lane-dense 128-wide output for tiny latency-bound batches (no masked
    # stores); narrow 8-lane output for multi-block throughput batches (cuts
    # the ~95%-padded HBM writeback).
    out_lanes = WIDE if Bp <= block_b else _round_up(2 + A, 8)

    rows_w = packed_w.shape[0]
    grid = (Bp // TB,)
    grid_spec = pltpu.PrefetchScalarGridSpec(
        num_scalar_prefetch=0,
        grid=grid,
        in_specs=[
            pl.BlockSpec((TB, ni_pad), lambda i: (i, 0)),      # x tile
            pl.BlockSpec((rows_w, WIDE), lambda i: (0, 0)),    # weights: resident
            pl.BlockSpec((8, WIDE), lambda i: (0, 0)),         # biases: resident
        ],
        out_specs=pl.BlockSpec((TB, out_lanes), lambda i: (i, 0)),
    )

    flops = 2 * Bp * (ni_pad * WIDE + WIDE * WIDE + WIDE * WIDE)
    bytes_accessed = (Bp * ni_pad * 2 + packed_w.size * 2 + packed_b.size * 4
                      + Bp * out_lanes * 4)
    cost = pl.CostEstimate(flops=flops,
                           transcendentals=2 * Bp * WIDE,
                           bytes_accessed=bytes_accessed)

    fn = pl.pallas_call(
        functools.partial(policy_act_kernel, rows=rows, ni_pad=ni_pad,
                          out_lanes=out_lanes),
        out_shape=jax.ShapeDtypeStruct((Bp, out_lanes), jnp.float32),
        grid_spec=grid_spec,
        compiler_params=pltpu.CompilerParams(
            dimension_semantics=("parallel",)),
        cost_estimate=cost,
    )
    y = fn(x, packed_w, packed_b)

    value = y[:B, 0:1]
    action = y[:B, 1:1 + A]
    logp = y[:B, 1 + A:2 + A]
    return value, action, logp


# ----------------------------------------------------------------------------
# Deterministic init: orthogonal weights (gain sqrt(2)), zero biases, zero
# logstd — matching MLPBase / DiagGaussian AddBias initialization.
# ----------------------------------------------------------------------------
def orthogonal_linear(key, in_features, out_features, gain):
    # torch convention: weight is (out, in); orthogonalize, then store as (in, out)
    rows, cols = out_features, in_features
    a = jax.random.normal(key, (max(rows, cols), min(rows, cols)), jnp.float32)
    q, r = jnp.linalg.qr(a)
    q = q * jnp.sign(jnp.diagonal(r))[None, :]
    if rows < cols:
        q = q.T
    w = gain * q[:rows, :cols]
    return w.T.astype(jnp.float32)                                # (in, out)


def init_params(key, num_inputs, hidden, num_actions):
    keys = jax.random.split(key, 6)
    g = math.sqrt(2.0)
    return {
        "cw1": orthogonal_linear(keys[0], num_inputs, hidden, g),
        "cb1": jnp.zeros((1, hidden), jnp.float32),
        "cw2": orthogonal_linear(keys[1], hidden, hidden, g),
        "cb2": jnp.zeros((1, hidden), jnp.float32),
        "hw":  orthogonal_linear(keys[2], hidden, 1, g),
        "hb":  jnp.zeros((1, 1), jnp.float32),
        "aw1": orthogonal_linear(keys[3], num_inputs, hidden, g),
        "ab1": jnp.zeros((1, hidden), jnp.float32),
        "aw2": orthogonal_linear(keys[4], hidden, hidden, g),
        "ab2": jnp.zeros((1, hidden), jnp.float32),
        "mw":  orthogonal_linear(keys[5], hidden, num_actions, g),
        "mb":  jnp.zeros((1, num_actions), jnp.float32),
        "logstd": jnp.zeros((1, num_actions), jnp.float32),       # learned AddBias
    }


# pure-JAX reference (unfused, mirrors the PyTorch forward).
# quantize_bf16=True mirrors the kernel's bf16 weight/activation rounding so
# the kernel can be checked at tight tolerance; the f32 reference is checked
# at a loose tolerance (bf16 packing is an accepted, documented approximation).
def reference_act(x, p, *, quantize_bf16=False):
    def q(a):
        return a.astype(jnp.bfloat16).astype(jnp.float32) if quantize_bf16 else a

    xq = q(x)
    hc = q(jnp.tanh(xq @ q(p["cw1"]) + p["cb1"]))
    hc = q(jnp.tanh(hc @ q(p["cw2"]) + p["cb2"]))
    value = hc @ q(p["hw"]) + p["hb"]

    ha = q(jnp.tanh(xq @ q(p["aw1"]) + p["ab1"]))
    ha = q(jnp.tanh(ha @ q(p["aw2"]) + p["ab2"]))
    mean = ha @ q(p["mw"]) + p["mb"]

    action = mean                                                 # deterministic mode
    std = jnp.exp(p["logstd"])
    z = (action - mean) / std
    per_dim = -0.5 * z * z - p["logstd"] - 0.5 * math.log(2.0 * math.pi)
    logp = jnp.sum(per_dim, axis=-1, keepdims=True)
    return value, action, logp


if __name__ == "__main__":
    key = jax.random.PRNGKey(0)
    k_param, k_x1, k_x2 = jax.random.split(key, 3)

    num_inputs = 16    # obs_shape[0]
    num_actions = 4    # action_space.shape[0]

    params = init_params(k_param, num_inputs, HIDDEN, num_actions)
    packed_w, packed_b, rows = pack_params(params, num_inputs, num_actions)

    # (name, key, batch): small latency-bound batch (single block, 128-lane
    # output) and a multi-block throughput batch (grid=2, narrow output).
    for name, k, batch in (("latency", k_x1, 8), ("throughput", k_x2, 300)):
        x = jax.random.normal(k, (batch, num_inputs), dtype=jnp.float32)

        value, action, logp = policy_act(
            x, packed_w, packed_b, rows, num_inputs, num_actions)
        jax.block_until_ready((value, action, logp))

        assert value.shape == (batch, 1)
        assert action.shape == (batch, num_actions)
        assert logp.shape == (batch, 1)

        # tight check vs bf16-mirrored reference (same rounding as the kernel)
        v_q, a_q, lp_q = reference_act(x, params, quantize_bf16=True)
        assert jnp.allclose(value, v_q, atol=1e-4, rtol=1e-4), name
        assert jnp.allclose(action, a_q, atol=1e-4, rtol=1e-4), name
        assert jnp.allclose(logp, lp_q, atol=1e-4, rtol=1e-4), name

        # loose sanity check vs the full-f32 PyTorch-equivalent reference
        v_f, a_f, lp_f = reference_act(x, params, quantize_bf16=False)
        assert jnp.allclose(value, v_f, atol=1e-1, rtol=1e-1), name
        assert jnp.allclose(action, a_f, atol=1e-1, rtol=1e-1), name
        assert jnp.allclose(logp, lp_f, atol=1e-1, rtol=1e-1), name

    print("KERNEL_OK")
</pallas_src>

<mosaic_0001>
module attributes {stable_mosaic.version = 11 : i64} {
  func.func @policy_act_kernel(%arg0: i32, %arg1: memref<8x16xbf16, #tpu.memory_space<vmem>>, %arg2: memref<272x128xbf16, #tpu.memory_space<vmem>>, %arg3: memref<8x128xf32, #tpu.memory_space<vmem>>, %arg4: memref<8x128xf32, #tpu.memory_space<vmem>>) attributes {dimension_semantics = [#tpu.dimension_semantics<parallel>], iteration_bounds = array<i64: 1>, scalar_prefetch = 0 : i64, scratch_operands = 0 : i64, tpu.core_type = #tpu.core_type<tc>, window_params = [{transform_indices = @transform_0, window_bounds = array<i64: 8, 16>}, {pipeline_mode = #tpu.pipeline_mode<synchronous>, transform_indices = @transform_1, window_bounds = array<i64: 272, 128>}, {pipeline_mode = #tpu.pipeline_mode<synchronous>, transform_indices = @transform_2, window_bounds = array<i64: 8, 128>}, {transform_indices = @transform_3, window_bounds = array<i64: 8, 128>}]} {
    %c0 = arith.constant 0 : index
    %c0_0 = arith.constant 0 : index
    %0 = vector.load %arg1[%c0, %c0_0] : memref<8x16xbf16, #tpu.memory_space<vmem>>, vector<8x16xbf16>
    %c0_1 = arith.constant 0 : index
    %c0_2 = arith.constant 0 : index
    %1 = vector.load %arg2[%c0_1, %c0_2] : memref<272x128xbf16, #tpu.memory_space<vmem>>, vector<16x128xbf16>
    %cst = arith.constant dense<0.000000e+00> : vector<8x128xf32>
    %2 = tpu.matmul %0, %1, %cst {dimension_numbers = #tpu.dot_dimension_numbers<[1], [0], [0], [1], [0, 0, 1, 1], [], []>} : vector<8x16xbf16>, vector<16x128xbf16>, vector<8x128xf32> -> vector<8x128xf32>
    %c0_3 = arith.constant 0 : index
    %c0_4 = arith.constant 0 : index
    %3 = vector.load %arg3[%c0_3, %c0_4] : memref<8x128xf32, #tpu.memory_space<vmem>>, vector<1x128xf32>
    %4 = vector.broadcast %3 : vector<1x128xf32> to vector<8x128xf32>
    %5 = arith.addf %2, %4 : vector<8x128xf32>
    %6 = math.tanh %5 : vector<8x128xf32>
    %c16 = arith.constant 16 : index
    %c0_5 = arith.constant 0 : index
    %7 = vector.load %arg2[%c16, %c0_5] : memref<272x128xbf16, #tpu.memory_space<vmem>>, vector<128x128xbf16>
    %8 = arith.truncf %6 : vector<8x128xf32> to vector<8x128xbf16>
    %cst_6 = arith.constant dense<0.000000e+00> : vector<8x128xf32>
    %9 = tpu.matmul %8, %7, %cst_6 {dimension_numbers = #tpu.dot_dimension_numbers<[1], [0], [0], [1], [0, 0, 1, 1], [], []>} : vector<8x128xbf16>, vector<128x128xbf16>, vector<8x128xf32> -> vector<8x128xf32>
    %c1 = arith.constant 1 : index
    %c0_7 = arith.constant 0 : index
    %10 = vector.load %arg3[%c1, %c0_7] : memref<8x128xf32, #tpu.memory_space<vmem>>, vector<1x128xf32>
    %11 = vector.broadcast %10 : vector<1x128xf32> to vector<8x128xf32>
    %12 = arith.addf %9, %11 : vector<8x128xf32>
    %13 = math.tanh %12 : vector<8x128xf32>
    %c144 = arith.constant 144 : index
    %c0_8 = arith.constant 0 : index
    %14 = vector.load %arg2[%c144, %c0_8] : memref<272x128xbf16, #tpu.memory_space<vmem>>, vector<128x128xbf16>
    %15 = arith.truncf %13 : vector<8x128xf32> to vector<8x128xbf16>
    %cst_9 = arith.constant dense<0.000000e+00> : vector<8x128xf32>
    %16 = tpu.matmul %15, %14, %cst_9 {dimension_numbers = #tpu.dot_dimension_numbers<[1], [0], [0], [1], [0, 0, 1, 1], [], []>} : vector<8x128xbf16>, vector<128x128xbf16>, vector<8x128xf32> -> vector<8x128xf32>
    %c2 = arith.constant 2 : index
    %c0_10 = arith.constant 0 : index
    %17 = vector.load %arg3[%c2, %c0_10] : memref<8x128xf32, #tpu.memory_space<vmem>>, vector<1x128xf32>
    %18 = vector.broadcast %17 : vector<1x128xf32> to vector<8x128xf32>
    %19 = arith.addf %16, %18 : vector<8x128xf32>
    %c0_11 = arith.constant 0 : index
    %c0_12 = arith.constant 0 : index
    %20 = vector.load %arg4[%c0_11, %c0_12] : memref<8x128xf32, #tpu.memory_space<vmem>>, vector<8x128xf32>
    tpu.vector_store %arg4[%c0_11, %c0_12], %19 {strides = array<i32>} : memref<8x128xf32, #tpu.memory_space<vmem>>, vector<8x128xf32>,
    return
  }
  func.func @transform_0(%arg0: i32) -> (i32, i32) {
    %c0_i32 = arith.constant 0 : i32
    %c0_i32_0 = arith.constant 0 : i32
    return %arg0, %c0_i32 : i32, i32
  }
  func.func @transform_1(%arg0: i32) -> (i32, i32) {
    %c0_i32 = arith.constant 0 : i32
    %c0_i32_0 = arith.constant 0 : i32
    %c0_i32_1 = arith.constant 0 : i32
    return %c0_i32, %c0_i32_0 : i32, i32
  }
  func.func @transform_2(%arg0: i32) -> (i32, i32) {
    %c0_i32 = arith.constant 0 : i32
    %c0_i32_0 = arith.constant 0 : i32
    %c0_i32_1 = arith.constant 0 : i32
    return %c0_i32, %c0_i32_0 : i32, i32
  }
  func.func @transform_3(%arg0: i32) -> (i32, i32) {
    %c0_i32 = arith.constant 0 : i32
    %c0_i32_0 = arith.constant 0 : i32
    return %arg0, %c0_i32 : i32, i32
  }
}

</mosaic_0001>

<bundles_post_ra>
// kernel: tpu_custom_call.1
= control target key start
LH: loop header
LB: loop body
LE: loop exit
PB: predicated region body
PF: predicated region fallthrough
CT: control target
= control target key end

     0   :  { %8 = vsyncpa [#allocation3], 0  ;;  %s612_s0 = inlined_call_operand.hbm [shape: bf16[8,16], index: 0, kind: input, shape index: {}]   ;;  %s613_s1 = inlined_call_operand.hbm [shape: bf16[272,128], index: 1, kind: input, shape index: {}]   ;;  %s614_s2 = inlined_call_operand.hbm [shape: f32[8,128], index: 2, kind: input, shape index: {}]   ;;  %s615_s3 = inlined_call_operand.hbm [shape: f32[8,128], index: 3, kind: output, shape index: {}]  }
   0x1   :  { %9 = vsyncpa [#allocation6], 0 }
   0x2   :  { %10 = vsyncpa [#allocation4], 0  ;;  %s552_s12 = smov [#allocation5]  }
   0x3   :  { %s26_s13 = sshll.u32 %s552_s12, 4  ;;  %s27_s13 = int_to_ptr.vmem [resolvable:$true] %s26_s13 }
   0x4   :  { %s474_s14 = scalar_lea.vmem %s27_s13, 2176  ;;  %p479_p1 = scmp.lt.s32.totalorder %s27_s13, %s27_s13 }
   0x5   :  { %p475_p0 = scmp.ne.s32.totalorder %s27_s13, %s474_s14  ;;  %p480_p2 = scmp.lt.s32.totalorder %s474_s14, %s474_s14 }
   0x7   :  { %p481_p3 = por %p480_p2, %p479_p1 }
   0x9   :  { %p482_p4 = pnand %p481_p3, %p475_p0 }
   0xb   :  { %485 = shalt.err (!%p482_p4)
}
   0xc   :  { %s553_s15 = smov 64   ;;  %s554_s16 = smov 4  }
   0xd   :  { %32 = dma.hbm_to_vmem [thread:$0]  %s613_s1, 2176, %s27_s13, [#allocation6], %s553_s15, %s553_s15, %s554_s16  }
   0xe   :  { %s555_s19 = smov [#allocation2]   ;;  %s556_s21 = smov [#allocation7]  }
   0xf   :  { %s17_s20 = sshll.u32 %s555_s19, 4  ;;  %s39_s22 = sshll.u32 %s556_s21, 4  ;;  %s18_s20 = int_to_ptr.vmem [resolvable:$true] %s17_s20  ;;  %s40_s22 = int_to_ptr.vmem [resolvable:$true] %s39_s22 }
  0x10   :  { %s494_s23 = scalar_lea.vmem %s18_s20, 64  ;;  %p499_p6 = scmp.lt.s32.totalorder %s18_s20, %s18_s20 }
  0x11   :  { %p495_p5 = scmp.ne.s32.totalorder %s18_s20, %s494_s23  ;;  %p500_p7 = scmp.lt.s32.totalorder %s494_s23, %s494_s23 }
  0x13   :  { %p501_p8 = por %p500_p7, %p499_p6 }
  0x15   :  { %p502_p9 = pnand %p501_p8, %p495_p5 }
  0x17   :  { %505 = shalt.err (!%p502_p9)
}
  0x18   :  { %20 = dma.hbm_to_vmem [thread:$0]  %s612_s0, 64, %s18_s20, [#allocation3]  }
  0x19   :  { %s514_s26 = scalar_lea.vmem %s40_s22, 128  ;;  %p519_p11 = scmp.lt.s32.totalorder %s40_s22, %s40_s22 }
  0x1a   :  { %p515_p10 = scmp.ne.s32.totalorder %s40_s22, %s514_s26  ;;  %p520_p12 = scmp.lt.s32.totalorder %s514_s26, %s514_s26 }
  0x1c   :  { %p521_p13 = por %p520_p12, %p519_p11 }
  0x1e   :  { %p522_p0 = pnand %p521_p13, %p515_p10 }
  0x20   :  { %525 = shalt.err (!%p522_p0)
}
  0x21   :  { %42 = dma.hbm_to_vmem [thread:$0]  %s614_s2, 128, %s40_s22, [#allocation6]  }
  0x22   :  { %546 = dma.done.wait [#allocation3], 64  }
  0x23   :  { %547 = vsyncadd [#allocation3], 4294967232 }
  0x24   :  { %548 = dma.done.wait [#allocation6], 2304  }
  0x25   :  { %549 = vsyncadd [#allocation6], 4294964992  ;;  %v557_v0 = vmov 0.0   ;;  %vm558_vm0 = vmmov 0   ;;  %v445_v1 = vld [vmem:[#allocation5] sm:$0xff]   ;;  %vm67_vm1 = vcmask 130048  }
  0x26   :  { %391 = vmatprep.subr.bf16.mxu0 %v557_v0  ;;  %393 = vmatprep.mubr.msk.bf16.mxu0 %vm558_vm0, %v557_v0  ;;  %v53_v2 = vld [vmem:[#allocation2] sm:$0xf]  ;;  %v446_v3 = vld [vmem:[#allocation5 + $0x40] sm:$0xff]   ;;  %v448_v5 = vld [vmem:[#allocation5 + $0x30] sm:$0xff]   ;;  %s559_s0 = smov [#allocation8]  }
  0x27   :  { %397 = vmatprep.subr.bf16.mxu1 %v557_v0  ;;  %413 = vmatprep.mubr.msk.bf16.mxu1 %vm558_vm0, %v557_v0  ;;  %v447_v4 = vld [vmem:[#allocation5 + $0x38] sm:$0xff]   ;;  %v449_v6 = vld [vmem:[#allocation5 + $0x28] sm:$0xff]   ;;  %v450_v7 = vld [vmem:[#allocation5 + $0x20] sm:$0xff]   ;;  %s340_s2 = sshll.u32 %s559_s0, 4  ;;  %s341_s2 = int_to_ptr.vmem [resolvable:$true] %s340_s2 }
  0x28   :  { %392 = vmatpush3.bf16.msra.mxu0 %v445_v1  ;;  %398 = vmatpush3.bf16.msra.mxu1 %v446_v3  ;;  %v451_v8 = vld [vmem:[#allocation5 + $0x18] sm:$0xff]   ;;  %v452_v9 = vld [vmem:[#allocation5 + $0x10] sm:$0xff]   ;;  %v453_v10 = vld [vmem:[#allocation5 + $0x8] sm:$0xff]   ;;  %s526_s28 = scalar_lea.vmem %s341_s2, 128  ;;  %p531_p2 = scmp.lt.s32.totalorder %s341_s2, %s341_s2 }
  0x29   :  { %417 = vmatprep.subr.bf16.mxu0 %v557_v0  ;;  %399 = vmatprep.subr.bf16.mxu1 %v557_v0  ;;  %v454_v11 = vld [vmem:[#allocation5 + $0x80] sm:$0xff]   ;;  %v455_v12 = vld [vmem:[#allocation5 + $0x78] sm:$0xff]   ;;  %v456_v13 = vld [vmem:[#allocation5 + $0x70] sm:$0xff]   ;;  %p527_p1 = scmp.ne.s32.totalorder %s341_s2, %s526_s28  ;;  %p532_p3 = scmp.lt.s32.totalorder %s526_s28, %s526_s28 }
  0x2a   :  { %v350_v14 = vld [vmem:[#allocation7] ss:$0 sm:$0xff]  ;;  %v458_v23 = vld [vmem:[#allocation5 + $0x60] sm:$0xff]   ;;  %v459_v24 = vld [vmem:[#allocation5 + $0x58] sm:$0xff]  }
  0x2b   :  { %394 = vmatmul.mubr.msk.bf16.vlgmr.msra.gmra.mxu0 %vm67_vm1, %v53_v2  ;;  %v457_v22 = vld [vmem:[#allocation5 + $0x68] sm:$0xff]   ;;  %v460_v25 = vld [vmem:[#allocation5 + $0x50] sm:$0xff]   ;;  %p533_p4 = por %p532_p3, %p531_p2 }
  0x2c   :  { %433 = vmatprep.mubr.msk.bf16.mxu0 %vm558_vm0, %v557_v0  ;;  %400 = vmatpush3.bf16.msra.mxu1 %v447_v4  ;;  %v461_v26 = vld [vmem:[#allocation5 + $0x48] sm:$0xff]  }
  0x2d   :  { %401 = vmatprep.subr.bf16.mxu1 %v557_v0  ;;  %418 = vmatpush3.bf16.msra.mxu0 %v454_v11  ;;  %v353_v27 = vld [vmem:[#allocation7 + $0x1] ss:$0 sm:$0xff]  ;;  %v362_v35 = vld [vmem:[#allocation7 + $0x2] ss:$0 sm:$0xff]  ;;  %p534_p5 = pnand %p533_p4, %p527_p1 }
  0x2e   :  { %419 = vmatprep.subr.bf16.mxu0 %v557_v0 }
  0x30   :  { %402 = vmatpush3.bf16.msra.mxu1 %v448_v5 }
  0x31   :  { %403 = vmatprep.subr.bf16.mxu1 %v557_v0  ;;  %420 = vmatpush3.bf16.msra.mxu0 %v455_v12 }
  0x32   :  { %421 = vmatprep.subr.bf16.mxu0 %v557_v0 }
  0x34   :  { %404 = vmatpush3.bf16.msra.mxu1 %v449_v6 }
  0x35   :  { %405 = vmatprep.subr.bf16.mxu1 %v557_v0  ;;  %422 = vmatpush3.bf16.msra.mxu0 %v456_v13 }
  0x36   :  { %423 = vmatprep.subr.bf16.mxu0 %v557_v0 }
  0x38   :  { %406 = vmatpush3.bf16.msra.mxu1 %v450_v7 }
  0x39   :  { %407 = vmatprep.subr.bf16.mxu1 %v557_v0  ;;  %424 = vmatpush3.bf16.msra.mxu0 %v457_v22 }
  0x3a   :  { %425 = vmatprep.subr.bf16.mxu0 %v557_v0 }
  0x3c   :  { %408 = vmatpush3.bf16.msra.mxu1 %v451_v8 }
  0x3d   :  { %409 = vmatprep.subr.bf16.mxu1 %v557_v0  ;;  %426 = vmatpush3.bf16.msra.mxu0 %v458_v23 }
  0x3e   :  { %427 = vmatprep.subr.bf16.mxu0 %v557_v0 }
  0x40   :  { %410 = vmatpush3.bf16.msra.mxu1 %v452_v9 }
  0x41   :  { %411 = vmatprep.subr.bf16.mxu1 %v557_v0  ;;  %428 = vmatpush3.bf16.msra.mxu0 %v459_v24 }
  0x42   :  { %429 = vmatprep.subr.bf16.mxu0 %v557_v0 }
  0x44   :  { %412 = vmatpush3.bf16.msra.mxu1 %v453_v10 }
  0x45   :  { %430 = vmatpush3.bf16.msra.mxu0 %v460_v25 }
  0x46   :  { %431 = vmatprep.subr.bf16.mxu0 %v557_v0 }
  0x49   :  { %432 = vmatpush3.bf16.msra.mxu0 %v461_v26 }
  0xeb   :  { %v105_v15 = vpop.f32.mrf.mxu0 }
  0xec   :  { %v106_v16 = vadd.f32 %v350_v14, %v105_v15 }
  0xed   :  { %v395_v17 = vpop.f32.mrf.mxu0 }
  0xee   :  { %462 = vtanh.f32 %v106_v16 }
  0xef   :  { %v108_v18 = vpop.f32.mrf.mxu0 }
  0xf1   :  { %v396_v19 = vpop.f32.mrf.mxu0 }
  0xfb   :  { %v463_v20 = vpop.eup %462 }
  0xfc   :  { %v128_v21 = vpack.c.bf16 %v463_v20, %v463_v20 }
  0xfe   :  { %414 = vmatmul.mubr.bf16.vlgmr.msra.gmra.mxu1 %v128_v21 }
 0x1be   :  { %v216_v28 = vpop.f32.mrf.mxu1 }
 0x1bf   :  { %v217_v29 = vadd.f32 %v353_v27, %v216_v28 }
 0x1c0   :  { %v415_v30 = vpop.f32.mrf.mxu1 }
 0x1c1   :  { %464 = vtanh.f32 %v217_v29 }
 0x1c2   :  { %v219_v31 = vpop.f32.mrf.mxu1 }
 0x1c4   :  { %v416_v32 = vpop.f32.mrf.mxu1 }
 0x1ce   :  { %v465_v33 = vpop.eup %464 }
 0x1cf   :  { %v239_v34 = vpack.c.bf16 %v465_v33, %v465_v33 }
 0x1d1   :  { %434 = vmatmul.mubr.bf16.vlgmr.msra.gmra.mxu0 %v239_v34 }
 0x291   :  { %v327_v36 = vpop.f32.mrf.mxu0 }
 0x292   :  { %v328_v37 = vadd.f32 %v362_v35, %v327_v36 }
 0x293   :  { %v435_v38 = vpop.f32.mrf.mxu0 }
 0x294   :  { %333 = vst [vmem:[#allocation8] sm:$0xff] %v328_v37 }
 0x295   :  { %v330_v39 = vpop.f32.mrf.mxu0 }
 0x296   :  { %537 = shalt.err (!%p534_p5)
}
 0x297   :  { %343 = dma.vmem_to_hbm [thread:$0]  %s341_s2, 128, %s615_s3, [#allocation4]   ;;  %v436_v40 = vpop.f32.mrf.mxu0 }
 0x298   :  { %550 = dma.done.wait [#allocation4], 128  }
 0x299   :  { %551 = vsyncadd [#allocation4], 4294967168 }
 0x29a   :  { %347 = vsyncpa [#allocation3], 1 }
 0x29b   :  { %348 = vsyncpa [#allocation6], 1 }
 0x29c   :  { %349 = vsyncpa [#allocation4], 1 }

</bundles_post_ra>
